<compile_context>
chip_gen: v6e
topology: v6e:2x2x1
jax: 0.10.0
libtpu: 0.0.40
codegen_flags: <defaults>
</compile_context>

<pallas_src>
import functools

import jax
import jax.numpy as jnp
from jax.experimental import pallas as pl
from jax.experimental.pallas import tpu as pltpu


def _fused_kernel(mix_ref,            # SMEM (1,1) f32 : mixup factor lam
                  lens_ref,           # VMEM (TB,2) i32: [:,0]=x1 lens, [:,1]=x2 lens
                  x_ref,              # VMEM (TB, S_all, D) bf16/f32 embeddings
                  wenc_ref, benc_ref, # VMEM (D,D) bf16/f32, (1,D) f32
                  wcls_ref, bcls_ref, # VMEM (D,C_pad) bf16/f32, (1,C_pad) f32
                  out_ref,            # VMEM (TB, C_pad) f32 logits
                  *, true_seq_len, mixed_streams):
    TB, S_all, D = x_ref.shape

    # ---- encoder: one big (TB*S_all, D) x (D, D) matmul, f32 accumulation ---
    x = x_ref[...].reshape(TB * S_all, D)
    enc = jnp.dot(x, wenc_ref[...], preferred_element_type=jnp.float32)
    enc = jnp.maximum(enc + benc_ref[...].astype(jnp.float32), 0.0)
    enc = enc.reshape(TB, S_all, D)

    # ---- per-position weight built directly in the (TB, S_all, D) layout ----
    pos = jax.lax.broadcasted_iota(jnp.int32, (TB, S_all, D), 1)
    lens2d = lens_ref[...]                               # (TB, 2) i32
    l1 = lens2d[:, 0:1].reshape(TB, 1, 1)
    lam = mix_ref[0, 0]

    if mixed_streams:
        Sp = S_all // 2
        l2 = lens2d[:, 1:2].reshape(TB, 1, 1)
        in_x1 = pos < Sp
        pos_local = jnp.where(in_x1, pos, pos - Sp)
        lens_sel = jnp.where(in_x1, l1, l2)
        lam_sel = jnp.where(in_x1, lam, 1.0 - lam)
        weight = jnp.where(pos_local < lens_sel, lam_sel, 0.0)   # (TB, S_all, D)
        enc = enc * weight
        # ManifoldMixup (lam*x1 + (1-lam)*x2 already folded into weight) + ReLU
        mixed = jnp.maximum(enc[:, :Sp, :] + enc[:, Sp:, :], 0.0)  # (TB, Sp, D)
    else:
        # no-mixup path: x_encoded = x1_encoded; lam forced to 1 in the wrapper
        mixed = enc * jnp.where(pos < l1, lam, 0.0)

    # ---- mean pool over the (full) sequence, cls head ------------------------
    pooled = jnp.sum(mixed, axis=1) * (1.0 / float(true_seq_len))   # f32 (TB, D)
    out_ref[...] = (jnp.dot(pooled.astype(wcls_ref.dtype), wcls_ref[...],
                            preferred_element_type=jnp.float32)
                    + bcls_ref[...].astype(jnp.float32))


def generic_mixup_forward(params, x1_ids, x1_lens=None, x2_ids=None, x2_lens=None,
                          mixup_factor=1.0, batch_tile=32,
                          compute_dtype=jnp.bfloat16):
    emb = params["emb"]                               # (V, D)
    w_enc, b_enc = params["w_enc"], params["b_enc"]   # (D, D), (1, D)
    w_cls, b_cls = params["w_cls"], params["b_cls"]   # (D, C), (1, C)

    B, S = x1_ids.shape
    D = emb.shape[1]
    C = w_cls.shape[1]

    mixed_streams = x2_ids is not None
    if not mixed_streams:                 # no-mixup path: single stream, lam := 1
        mixup_factor = 1.0
    if x1_lens is None:
        x1_lens = jnp.full((B,), S, jnp.int32)
    if mixed_streams and x2_lens is None:
        x2_lens = jnp.full((B,), S, jnp.int32)

    # 16-aligned seq padding: bf16 packs 16 rows / sublane tile, keeps the
    # in-kernel reshape and x1/x2 half-split on tile boundaries.
    S_pad = ((S + 15) // 16) * 16
    S_all = (2 if mixed_streams else 1) * S_pad
    elt = jnp.dtype(compute_dtype).itemsize

    # ---- batch tiling --------------------------------------------------------
    if B < 16:
        TB = B                            # one full-batch tile (block == array dims)
    else:
        # multiple-of-8 tile; keep double-buffered activation block inside a
        # conservative VMEM budget (sized against v7x's 64 MiB/TC) and aim for
        # >= 2 grid steps so v7x's two TensorCores both get work.
        act_budget = 24 << 20
        tb_vmem = max(8, act_budget // (2 * S_all * D * elt))
        tb_half = max(8, (B + 1) // 2)
        TB = max(8, (min(batch_tile, tb_vmem, tb_half) // 8) * 8)
    B_pad = ((B + TB - 1) // TB) * TB

    def pad_ids(ids):
        return jnp.pad(ids, ((0, B_pad - B), (0, S_pad - S)))

    def pad_lens(lens):
        return jnp.pad(lens.astype(jnp.int32), (0, B_pad - B))

    if mixed_streams:
        ids = jnp.concatenate([pad_ids(x1_ids), pad_ids(x2_ids)], axis=1)
        lens = jnp.stack([pad_lens(x1_lens), pad_lens(x2_lens)], axis=1)
    else:
        ids = pad_ids(x1_ids)
        l1 = pad_lens(x1_lens)
        lens = jnp.stack([l1, l1], axis=1)          # col 1 unused on this path

    # gather straight from a bf16 table -> the materialized stream (and the
    # kernel's dominant DMA) is half the bytes of the f32 version.
    emb_c = emb.astype(compute_dtype)
    x_cat = emb_c[ids]                              # (B_pad, S_all, D)

    # lane-dense output: pad cls head to >=128 lanes (zeros -> sliced off later)
    C_pad = ((C + 127) // 128) * 128
    w_enc_c = w_enc.astype(compute_dtype)
    b_enc_f = b_enc.reshape(1, D).astype(jnp.float32)
    w_cls_p = jnp.zeros((D, C_pad), compute_dtype).at[:, :C].set(
        w_cls.astype(compute_dtype))
    b_cls_p = jnp.zeros((1, C_pad), jnp.float32).at[:, :C].set(
        b_cls.reshape(1, C).astype(jnp.float32))

    mix = jnp.full((1, 1), mixup_factor, dtype=jnp.float32)

    kernel = functools.partial(_fused_kernel, true_seq_len=S,
                               mixed_streams=mixed_streams)

    flops = 2 * B_pad * S_all * D * D + 2 * B_pad * D * C_pad
    bytes_accessed = (B_pad * S_all * D * elt + B_pad * 2 * 4
                      + D * D * elt + D * 4 + D * C_pad * elt + C_pad * 4
                      + B_pad * C_pad * 4)
    est_vmem = (2 * TB * S_all * D * elt          # double-buffered activation block
                + 2 * TB * 2 * 4                  # lens
                + D * D * elt + D * 4             # encoder weights + bias
                + D * C_pad * elt + C_pad * 4     # cls head (padded)
                + 2 * TB * C_pad * 4)             # output block
    vmem_limit = int(min(64 << 20, max(32 << 20, 4 * est_vmem)))

    out = pl.pallas_call(
        kernel,
        out_shape=jax.ShapeDtypeStruct((B_pad, C_pad), jnp.float32),
        grid=(B_pad // TB,),
        in_specs=[
            pl.BlockSpec(memory_space=pltpu.MemorySpace.SMEM),      # mixup factor
            pl.BlockSpec((TB, 2), lambda b: (b, 0)),                # lens (i32)
            pl.BlockSpec((TB, S_all, D), lambda b: (b, 0, 0)),      # embeddings
            pl.BlockSpec((D, D), lambda b: (0, 0)),                 # W_enc
            pl.BlockSpec((1, D), lambda b: (0, 0)),                 # b_enc (f32)
            pl.BlockSpec((D, C_pad), lambda b: (0, 0)),             # W_cls (padded)
            pl.BlockSpec((1, C_pad), lambda b: (0, 0)),             # b_cls (padded)
        ],
        out_specs=pl.BlockSpec((TB, C_pad), lambda b: (b, 0)),
        compiler_params=pltpu.CompilerParams(
            dimension_semantics=("parallel",),
            vmem_limit_bytes=vmem_limit),
        cost_estimate=pl.CostEstimate(flops=flops, transcendentals=0,
                                      bytes_accessed=bytes_accessed),
    )(mix, lens, x_cat, w_enc_c, b_enc_f, w_cls_p, b_cls_p)

    return out[:B, :C]


def _reference_forward(params, x1_ids, x1_lens, x2_ids, x2_lens, mixup_factor):
    """Pure-JAX f32 reference of the same forward pass (correctness check)."""
    emb = params["emb"]
    S = x1_ids.shape[1]
    pos = jnp.arange(S, dtype=jnp.int32)

    def encode(ids, lens):
        x = emb[ids]
        h = jnp.maximum(jnp.einsum("bsd,de->bse", x, params["w_enc"])
                        + params["b_enc"][None], 0.0)
        mask = (pos[None, :] < lens[:, None]).astype(jnp.float32)[..., None]
        return h * mask

    e1 = encode(x1_ids, x1_lens)
    e2 = encode(x2_ids, x2_lens)
    mixed = jnp.maximum(mixup_factor * e1 + (1.0 - mixup_factor) * e2, 0.0)
    pooled = jnp.mean(mixed, axis=1)
    return jnp.einsum("bd,dc->bc", pooled, params["w_cls"]) + params["b_cls"]


if __name__ == "__main__":
    B, S, D, V, C = 2, 8, 32, 64, 8

    key = jax.random.PRNGKey(0)
    k_emb, k_we, k_be, k_wc, k_bc, k_x1, k_x2 = jax.random.split(key, 7)

    params = {
        "emb":   jax.random.normal(k_emb, (V, D), jnp.float32) * 0.1,
        "w_enc": jax.random.normal(k_we, (D, D), jnp.float32) * 0.1,
        "b_enc": jax.random.normal(k_be, (1, D), jnp.float32) * 0.1,
        "w_cls": jax.random.normal(k_wc, (D, C), jnp.float32) * 0.1,
        "b_cls": jax.random.normal(k_bc, (1, C), jnp.float32) * 0.1,
    }

    x1_ids = jax.random.randint(k_x1, (B, S), 0, V, dtype=jnp.int32)
    x2_ids = jax.random.randint(k_x2, (B, S), 0, V, dtype=jnp.int32)
    x1_lens = jnp.array([8, 5], dtype=jnp.int32)
    x2_lens = jnp.array([6, 8], dtype=jnp.int32)
    mixup_factor = 0.7

    ref = _reference_forward(params, x1_ids, x1_lens, x2_ids, x2_lens,
                             mixup_factor)

    # Production config: bf16 operands, whole prep + pallas_call under one jit.
    fwd_bf16 = jax.jit(functools.partial(generic_mixup_forward, params))
    logits = jax.block_until_ready(
        fwd_bf16(x1_ids, x1_lens, x2_ids, x2_lens, mixup_factor))
    assert logits.shape == (B, C)
    assert jnp.allclose(logits, ref, atol=2e-2, rtol=2e-2)

    # f32-operand path: tight check against the pure-JAX reference.
    fwd_f32 = jax.jit(functools.partial(generic_mixup_forward, params,
                                        compute_dtype=jnp.float32))
    logits_f32 = jax.block_until_ready(
        fwd_f32(x1_ids, x1_lens, x2_ids, x2_lens, mixup_factor))
    assert jnp.allclose(logits_f32, ref, atol=1e-5, rtol=1e-5)

    # No-mixup path (x2 is None): single-stream kernel, half the work.
    logits_nm = jax.block_until_ready(fwd_bf16(x1_ids, x1_lens))
    ref_nm = _reference_forward(params, x1_ids, x1_lens, x1_ids, x1_lens, 1.0)
    assert jnp.allclose(logits_nm, ref_nm, atol=2e-2, rtol=2e-2)

    print("KERNEL_OK")
</pallas_src>

<mosaic_0001>
module attributes {stable_mosaic.version = 11 : i64} {
  func.func @_fused_kernel(%arg0: i32, %arg1: memref<1x1xf32, #tpu.memory_space<smem>>, %arg2: memref<2x2xi32, #tpu.memory_space<vmem>>, %arg3: memref<2x32x32xbf16, #tpu.memory_space<vmem>>, %arg4: memref<32x32xbf16, #tpu.memory_space<vmem>>, %arg5: memref<1x32xf32, #tpu.memory_space<vmem>>, %arg6: memref<32x128xbf16, #tpu.memory_space<vmem>>, %arg7: memref<1x128xf32, #tpu.memory_space<vmem>>, %arg8: memref<2x128xf32, #tpu.memory_space<vmem>>) attributes {dimension_semantics = [#tpu.dimension_semantics<parallel>], iteration_bounds = array<i64: 1>, scalar_prefetch = 0 : i64, scratch_operands = 0 : i64, tpu.core_type = #tpu.core_type<tc>, window_params = [{transform_indices = @transform_0, window_bounds = array<i64: 1, 1>}, {transform_indices = @transform_1, window_bounds = array<i64: 2, 2>}, {transform_indices = @transform_2, window_bounds = array<i64: 2, 32, 32>}, {pipeline_mode = #tpu.pipeline_mode<synchronous>, transform_indices = @transform_3, window_bounds = array<i64: 32, 32>}, {pipeline_mode = #tpu.pipeline_mode<synchronous>, transform_indices = @transform_4, window_bounds = array<i64: 1, 32>}, {pipeline_mode = #tpu.pipeline_mode<synchronous>, transform_indices = @transform_5, window_bounds = array<i64: 32, 128>}, {pipeline_mode = #tpu.pipeline_mode<synchronous>, transform_indices = @transform_6, window_bounds = array<i64: 1, 128>}, {transform_indices = @transform_7, window_bounds = array<i64: 2, 128>}]} {
    %c0 = arith.constant 0 : index
    %c0_0 = arith.constant 0 : index
    %c0_1 = arith.constant 0 : index
    %0 = vector.load %arg3[%c0, %c0_0, %c0_1] : memref<2x32x32xbf16, #tpu.memory_space<vmem>>, vector<2x32x32xbf16>
    %1 = vector.shape_cast %0 : vector<2x32x32xbf16> to vector<64x32xbf16>
    %c0_2 = arith.constant 0 : index
    %c0_3 = arith.constant 0 : index
    %2 = vector.load %arg4[%c0_2, %c0_3] : memref<32x32xbf16, #tpu.memory_space<vmem>>, vector<32x32xbf16>
    %cst = arith.constant dense<0.000000e+00> : vector<64x32xf32>
    %3 = tpu.matmul %1, %2, %cst {dimension_numbers = #tpu.dot_dimension_numbers<[1], [0], [0], [1], [0, 0, 1, 1], [], []>} : vector<64x32xbf16>, vector<32x32xbf16>, vector<64x32xf32> -> vector<64x32xf32>
    %c0_4 = arith.constant 0 : index
    %c0_5 = arith.constant 0 : index
    %4 = vector.load %arg5[%c0_4, %c0_5] : memref<1x32xf32, #tpu.memory_space<vmem>>, vector<1x32xf32>
    %5 = vector.broadcast %4 : vector<1x32xf32> to vector<64x32xf32>
    %6 = arith.addf %3, %5 : vector<64x32xf32>
    %cst_6 = arith.constant 0.000000e+00 : f32
    %7 = vector.broadcast %cst_6 : f32 to vector<64x32xf32>
    %8 = arith.maximumf %6, %7 : vector<64x32xf32>
    %9 = vector.shape_cast %8 : vector<64x32xf32> to vector<2x32x32xf32>
    %10 = tpu.iota {dimensions = array<i32: 1>} : vector<2x32x32xi32>
    %c0_7 = arith.constant 0 : index
    %c0_8 = arith.constant 0 : index
    %11 = vector.load %arg2[%c0_7, %c0_8] : memref<2x2xi32, #tpu.memory_space<vmem>>, vector<2x2xi32>
    %12 = vector.extract_strided_slice %11 {offsets = [0, 0], sizes = [2, 1], strides = [1, 1]} : vector<2x2xi32> to vector<2x1xi32>
    %13 = vector.shape_cast %12 : vector<2x1xi32> to vector<2x1x1xi32>
    %c0_9 = arith.constant 0 : index
    %c0_10 = arith.constant 0 : index
    %14 = memref.load %arg1[%c0_9, %c0_10] : memref<1x1xf32, #tpu.memory_space<smem>>
    %15 = vector.extract_strided_slice %11 {offsets = [0, 1], sizes = [2, 1], strides = [1, 1]} : vector<2x2xi32> to vector<2x1xi32>
    %16 = vector.shape_cast %15 : vector<2x1xi32> to vector<2x1x1xi32>
    %c16_i32 = arith.constant 16 : i32
    %17 = vector.broadcast %c16_i32 : i32 to vector<2x32x32xi32>
    %18 = arith.cmpi slt, %10, %17 : vector<2x32x32xi32>
    %c16_i32_11 = arith.constant 16 : i32
    %19 = vector.broadcast %c16_i32_11 : i32 to vector<2x32x32xi32>
    %20 = arith.subi %10, %19 : vector<2x32x32xi32>
    %21 = arith.select %18, %10, %20 : vector<2x32x32xi1>, vector<2x32x32xi32>
    %22 = vector.shape_cast %13 : vector<2x1x1xi32> to vector<2x1x1xi32>
    %23 = vector.broadcast %22 : vector<2x1x1xi32> to vector<2x32x32xi32>
    %24 = vector.shape_cast %16 : vector<2x1x1xi32> to vector<2x1x1xi32>
    %25 = vector.broadcast %24 : vector<2x1x1xi32> to vector<2x32x32xi32>
    %26 = arith.select %18, %23, %25 : vector<2x32x32xi1>, vector<2x32x32xi32>
    %cst_12 = arith.constant 1.000000e+00 : f32
    %27 = arith.subf %cst_12, %14 : f32
    %28 = vector.broadcast %14 : f32 to vector<2x32x32xf32>
    %29 = vector.broadcast %27 : f32 to vector<2x32x32xf32>
    %30 = arith.select %18, %28, %29 : vector<2x32x32xi1>, vector<2x32x32xf32>
    %31 = arith.cmpi slt, %21, %26 : vector<2x32x32xi32>
    %cst_13 = arith.constant 0.000000e+00 : f32
    %32 = vector.broadcast %cst_13 : f32 to vector<2x32x32xf32>
    %33 = arith.select %31, %30, %32 : vector<2x32x32xi1>, vector<2x32x32xf32>
    %34 = arith.mulf %9, %33 : vector<2x32x32xf32>
    %35 = vector.extract_strided_slice %34 {offsets = [0, 0, 0], sizes = [2, 16, 32], strides = [1, 1, 1]} : vector<2x32x32xf32> to vector<2x16x32xf32>
    %36 = vector.extract_strided_slice %34 {offsets = [0, 16, 0], sizes = [2, 16, 32], strides = [1, 1, 1]} : vector<2x32x32xf32> to vector<2x16x32xf32>
    %37 = arith.addf %35, %36 : vector<2x16x32xf32>
    %cst_14 = arith.constant 0.000000e+00 : f32
    %38 = vector.broadcast %cst_14 : f32 to vector<2x16x32xf32>
    %39 = arith.maximumf %37, %38 : vector<2x16x32xf32>
    %cst_15 = arith.constant dense<0.000000e+00> : vector<2x32xf32>
    %40 = vector.multi_reduction <add>, %39, %cst_15 [1] : vector<2x16x32xf32> to vector<2x32xf32>
    %cst_16 = arith.constant 1.250000e-01 : f32
    %41 = vector.broadcast %cst_16 : f32 to vector<2x32xf32>
    %42 = arith.mulf %40, %41 : vector<2x32xf32>
    %43 = arith.truncf %42 : vector<2x32xf32> to vector<2x32xbf16>
    %c0_17 = arith.constant 0 : index
    %c0_18 = arith.constant 0 : index
    %44 = vector.load %arg6[%c0_17, %c0_18] : memref<32x128xbf16, #tpu.memory_space<vmem>>, vector<32x128xbf16>
    %cst_19 = arith.constant dense<0.000000e+00> : vector<2x128xf32>
    %45 = tpu.matmul %43, %44, %cst_19 {dimension_numbers = #tpu.dot_dimension_numbers<[1], [0], [0], [1], [0, 0, 1, 1], [], []>} : vector<2x32xbf16>, vector<32x128xbf16>, vector<2x128xf32> -> vector<2x128xf32>
    %c0_20 = arith.constant 0 : index
    %c0_21 = arith.constant 0 : index
    %46 = vector.load %arg7[%c0_20, %c0_21] : memref<1x128xf32, #tpu.memory_space<vmem>>, vector<1x128xf32>
    %47 = vector.broadcast %46 : vector<1x128xf32> to vector<2x128xf32>
    %48 = arith.addf %45, %47 : vector<2x128xf32>
    %c0_22 = arith.constant 0 : index
    %c0_23 = arith.constant 0 : index
    %49 = vector.load %arg8[%c0_22, %c0_23] : memref<2x128xf32, #tpu.memory_space<vmem>>, vector<2x128xf32>
    tpu.vector_store %arg8[%c0_22, %c0_23], %48 {strides = array<i32>} : memref<2x128xf32, #tpu.memory_space<vmem>>, vector<2x128xf32>,
    return
  }
  func.func @transform_0(%arg0: i32) -> (i32, i32) {
    %c0_i32 = arith.constant 0 : i32
    %c0_i32_0 = arith.constant 0 : i32
    %c0_i32_1 = arith.constant 0 : i32
    return %c0_i32, %c0_i32_0 : i32, i32
  }
  func.func @transform_1(%arg0: i32) -> (i32, i32) {
    %c0_i32 = arith.constant 0 : i32
    %c0_i32_0 = arith.constant 0 : i32
    return %arg0, %c0_i32 : i32, i32
  }
  func.func @transform_2(%arg0: i32) -> (i32, i32, i32) {
    %c0_i32 = arith.constant 0 : i32
    %c0_i32_0 = arith.constant 0 : i32
    %c0_i32_1 = arith.constant 0 : i32
    return %arg0, %c0_i32, %c0_i32_0 : i32, i32, i32
  }
  func.func @transform_3(%arg0: i32) -> (i32, i32) {
    %c0_i32 = arith.constant 0 : i32
    %c0_i32_0 = arith.constant 0 : i32
    %c0_i32_1 = arith.constant 0 : i32
    return %c0_i32, %c0_i32_0 : i32, i32
  }
  func.func @transform_4(%arg0: i32) -> (i32, i32) {
    %c0_i32 = arith.constant 0 : i32
    %c0_i32_0 = arith.constant 0 : i32
    %c0_i32_1 = arith.constant 0 : i32
    return %c0_i32, %c0_i32_0 : i32, i32
  }
  func.func @transform_5(%arg0: i32) -> (i32, i32) {
    %c0_i32 = arith.constant 0 : i32
    %c0_i32_0 = arith.constant 0 : i32
    %c0_i32_1 = arith.constant 0 : i32
    return %c0_i32, %c0_i32_0 : i32, i32
  }
  func.func @transform_6(%arg0: i32) -> (i32, i32) {
    %c0_i32 = arith.constant 0 : i32
    %c0_i32_0 = arith.constant 0 : i32
    %c0_i32_1 = arith.constant 0 : i32
    return %c0_i32, %c0_i32_0 : i32, i32
  }
  func.func @transform_7(%arg0: i32) -> (i32, i32) {
    %c0_i32 = arith.constant 0 : i32
    %c0_i32_0 = arith.constant 0 : i32
    return %arg0, %c0_i32 : i32, i32
  }
}

</mosaic_0001>

<bundles_post_ra>
// kernel: generic_mixup_forward.1
= control target key start
LH: loop header
LB: loop body
LE: loop exit
PB: predicated region body
PF: predicated region fallthrough
CT: control target
= control target key end

     0   :  { %vm80_vm0 = vcmask 261120   ;;  %v166_v2 = vlaneseq  ;;  %v470_v4 = vmov 1   ;;  %v471_v8 = vmov 0   ;;  %s577_s0 = inlined_call_operand.<no memory space> [shape: f32[1,1], index: 0, kind: input, shape index: {}]   ;;  %s578_s1 = inlined_call_operand.vmem [shape: s32[2,2], index: 1, kind: input, shape index: {}]   ;;  %s579_s2 = inlined_call_operand.vmem [shape: bf16[2,32,32], index: 2, kind: input, shape index: {}]   ;;  %s580_s3 = inlined_call_operand.vmem [shape: bf16[32,32], index: 3, kind: input, shape index: {}]   ;;  %s581_s4 = inlined_call_operand.vmem [shape: f32[1,32], index: 4, kind: input, shape index: {}]   ;;  %s582_s5 = inlined_call_operand.vmem [shape: bf16[32,128], index: 5, kind: input, shape index: {}]   ;;  %s583_s6 = inlined_call_operand.vmem [shape: f32[1,128], index: 6, kind: input, shape index: {}]   ;;  %s584_s7 = inlined_call_operand.hbm [shape: f32[2,128], index: 7, kind: output, shape index: {}]  }
   0x1   :  { %v440_v0 = vld [vmem:[%s580_s3 + $0x8] sm:$0xff]   ;;  %v441_v1 = vld [vmem:[%s580_s3] sm:$0xff]   ;;  %438 = vset.pattern.permute.xlu1 %v470_v4  ;;  %v444_v6 = vld [vmem:[%s579_s2 + $0x10] sm:$0xff]   ;;  %437 = vset.pattern.permute.xlu0 %v471_v8  ;;  %v472_v10 = vmov 1966171168  }
   0x2   :  { %411 = vmatprep.subr.bf16.mxu0 %v440_v0  ;;  %v442_v3 = vld [vmem:[%s579_s2] sm:$0xff]   ;;  %v443_v5 = vld [vmem:[%s579_s2 + $0x8] sm:$0xff]   ;;  %v532_v7 = vshrl.u32 %v166_v2, 7  ;;  %v181_v11 = vunpack.c.l.s4 %v472_v10 }
   0x3   :  { %412 = vmatpush3.bf16.msra.mxu0 %v440_v0  ;;  %415 = vmatprep.mubr.msk.bf16.mxu0 %vm80_vm0, %v442_v3  ;;  %v394_v9 = vld.sshfl [vmem:[%s578_s1] sm:$0x11 pattern:$0x75316420] }
   0x4   :  { %413 = vmatprep.subr.bf16.mxu0 %v441_v1 }
   0x7   :  { %414 = vmatpush3.bf16.msra.mxu0 %v441_v1 }
   0x8   :  { %13 = vsyncpa [#allocation4], 0  ;;  %v179_v12 = vcombine.high %v394_v9, %v394_v9  ;;  %v182_v13 = vunpack.c.0.s8 %v181_v11  ;;  %v208_v15 = vsub.s32 0, %v532_v7  ;;  %v445_v18 = vld [vmem:[%s579_s2 + $0x18] sm:$0xff]   ;;  %v446_v21 = vld [vmem:[%s582_s5 + $0x8] sm:$0xff]   ;;  %v473_v22 = vmov 0.0  }
   0x9   :  { %423 = vmatprep.subr.bf16.mxu1 %v473_v22  ;;  %vm474_vm1 = vmmov 0   ;;  %v447_v23 = vld [vmem:[%s582_s5] sm:$0xff]   ;;  %s234_s18 = ssub.f32 1.0, %s577_s0  ;;  %v170_v24 = vadd.s32 24, %v532_v7  ;;  %v235_v31 = vstv %s577_s0  ;;  %v168_v33 = vadd.s32 8, %v532_v7  ;;  %s475_s5 = smov [#allocation3]  }
   0xa   :  { %416 = vmatmul.mubr.msk.bf16.vlgmr.msra.gmra.mxu0 %vm80_vm0, %v443_v5  ;;  %v185_v14 = vsub.s32 %v182_v13, %v532_v7  ;;  %427 = vmatprep.mubr.msk.bf16.mxu1 %vm474_vm1, %v473_v22  ;;  %v383_v25 = vld [vmem:[%s581_s4] ss:$0 sm:$0xff]  ;;  %vm310_vm10 = vcmask 1041409   ;;  %s375_s23 = sshll.u32 %s475_s5, 4  ;;  %s376_s23 = int_to_ptr.vmem [resolvable:$true] %s375_s23 }
   0xb   :  { %419 = vmatprep.mubr.msk.bf16.mxu0 %vm80_vm0, %v444_v6  ;;  %424 = vmatpush3.bf16.msra.mxu1 %v446_v21  ;;  %v236_v29 = vstv %s234_s18  ;;  %v397_v30 = vadd.s32 4294967280, %v170_v24  ;;  %s448_s24 = scalar_lea.vmem %s376_s23, 32  ;;  %p453_p1 = scmp.lt.s32.totalorder %s376_s23, %s376_s23 }
   0xc   :  { %v186_v16 = vrot.slane %v394_v9, %v185_v14  ;;  %v193_v17 = vrot.slane %v179_v12, %v185_v14  ;;  %425 = vmatprep.subr.bf16.mxu1 %v473_v22  ;;  %p449_p0 = scmp.ne.s32.totalorder %s376_s23, %s448_s24  ;;  %p454_p2 = scmp.lt.s32.totalorder %s448_s24, %s448_s24 }
   0xe   :  { %v209_v19 = vrot.slane %v186_v16, %v208_v15  ;;  %v213_v20 = vrot.slane %v193_v17, %v208_v15  ;;  %p455_p3 = por %p454_p2, %p453_p1 }
   0xf   :  { %426 = vmatpush3.bf16.msra.mxu1 %v447_v23 }
  0x10   :  { %221 = vperm.xlu1 %438, %v209_v19   ;;  %215 = vperm.xlu0 %437, %v209_v19   ;;  %p456_p4 = pnand %p455_p3, %p449_p0 }
  0x12   :  { %420 = vmatmul.mubr.msk.bf16.gmra.mxu0 %vm80_vm0, %v445_v18 }
  0x14   :  { %224 = vperm.xlu1 %438, %v213_v20   ;;  %218 = vperm.xlu0 %437, %v213_v20  }
  0x18   :  { %439 = vset.pattern.permute.xlu0 %v470_v4 }
  0x8b   :  { %v222_v26 = vpop.permute.xlu1 %221  ;;  %v216_v27 = vpop.permute.xlu0 %215 }
  0x8c   :  { %vm243_vm2 = vcmp.lt.s32.totalorder %v532_v7, %v222_v26  ;;  %vm241_vm3 = vcmp.lt.s32.totalorder %v532_v7, %v216_v27  ;;  %vm244_vm4 = vcmp.lt.s32.totalorder %v397_v30, %v222_v26  ;;  %vm242_vm5 = vcmp.lt.s32.totalorder %v168_v33, %v216_v27 }
  0x8d   :  { %v251_v37 = vsel %vm243_vm2, %v236_v29, 0.0  ;;  %v249_v38 = vsel %vm241_vm3, %v235_v31, 0.0  ;;  %v252_v49 = vsel %vm244_vm4, %v236_v29, 0.0  ;;  %v250_v50 = vsel %vm242_vm5, %v235_v31, 0.0 }
  0x8f   :  { %v225_v42 = vpop.permute.xlu1 %224  ;;  %v219_v44 = vpop.permute.xlu0 %218 }
  0x90   :  { %vm247_vm6 = vcmp.lt.s32.totalorder %v532_v7, %v225_v42  ;;  %vm245_vm7 = vcmp.lt.s32.totalorder %v532_v7, %v219_v44  ;;  %vm248_vm8 = vcmp.lt.s32.totalorder %v397_v30, %v225_v42  ;;  %vm246_vm9 = vcmp.lt.s32.totalorder %v168_v33, %v219_v44  ;;  %v398_v44 = vld [vmem:[%s583_s6] ss:$0 sm:$0xff] }
  0x91   :  { %v255_v60 = vsel %vm247_vm6, %v236_v29, 0.0  ;;  %v253_v61 = vsel %vm245_vm7, %v235_v31, 0.0  ;;  %v256_v14 = vsel %vm248_vm8, %v236_v29, 0.0  ;;  %v254_v15 = vsel %vm246_vm9, %v235_v31, 0.0 }
  0xca   :  { %v417_v28 = vpop.f32.mrf.mxu0 }
  0xcb   :  { %v136_v32 = vadd.f32 %v417_v28, %v383_v25 }
  0xcc   :  { %v127_v34 = vpop.f32.mrf.mxu0 }
  0xcd   :  { %v160_v35 = vmax.f32 %v136_v32, 0.0  ;;  %v128_v36 = vadd.f32 %v383_v25, %v127_v34 }
  0xce   :  { %v418_v39 = vpop.f32.mrf.mxu0 }
  0xcf   :  { %v158_v40 = vmax.f32 %v128_v36, 0.0  ;;  %v139_v41 = vadd.f32 %v418_v39, %v383_v25  ;;  %v259_v45 = vmul.f32 %v251_v37, %v160_v35 }
  0xd0   :  { %v130_v43 = vpop.f32.mrf.mxu0 }
  0xd1   :  { %v257_v46 = vmul.f32 %v249_v38, %v158_v40  ;;  %v161_v47 = vmax.f32 %v139_v41, 0.0  ;;  %v131_v48 = vadd.f32 %v383_v25, %v130_v43 }
  0xd2   :  { %v421_v51 = vpop.f32.mrf.mxu0 }
  0xd3   :  { %v265_v52 = vadd.f32 %v259_v45, %v257_v46  ;;  %v159_v53 = vmax.f32 %v131_v48, 0.0  ;;  %v152_v54 = vadd.f32 %v421_v51, %v383_v25  ;;  %v260_v56 = vmul.f32 %v252_v49, %v161_v47 }
  0xd4   :  { %v143_v55 = vpop.f32.mrf.mxu0 }
  0xd5   :  { %v258_v57 = vmul.f32 %v250_v50, %v159_v53  ;;  %v164_v58 = vmax.f32 %v152_v54, 0.0  ;;  %v144_v59 = vadd.f32 %v383_v25, %v143_v55  ;;  %v269_v63 = vmax.f32 %v265_v52, 0.0 }
  0xd6   :  { %v422_v62 = vpop.f32.mrf.mxu0 }
  0xd7   :  { %v266_v0 = vadd.f32 %v260_v56, %v258_v57  ;;  %v162_v1 = vmax.f32 %v144_v59, 0.0  ;;  %v155_v2 = vadd.f32 %v422_v62, %v383_v25  ;;  %v263_v5 = vmul.f32 %v255_v60, %v164_v58 }
  0xd8   :  { %v146_v3 = vpop.f32.mrf.mxu0  ;;  %v273_v9 = vsel %vm80_vm0, %v269_v63, 0.0 }
  0xd9   :  { %v270_v4 = vmax.f32 %v266_v0, 0.0  ;;  %v261_v6 = vmul.f32 %v253_v61, %v162_v1  ;;  %v147_v8 = vadd.f32 %v383_v25, %v146_v3  ;;  %v165_v7 = vmax.f32 %v155_v2, 0.0 }
  0xdb   :  { %v274_v10 = vsel %vm80_vm0, %v270_v4, 0.0  ;;  %v267_v11 = vadd.f32 %v263_v5, %v261_v6  ;;  %v163_v12 = vmax.f32 %v147_v8, 0.0  ;;  %v264_v16 = vmul.f32 %v256_v14, %v165_v7 }
  0xdc   :  { %v275_v13 = vadd.f32 %v274_v10, %v273_v9 }
  0xdd   :  { %v262_v17 = vmul.f32 %v254_v15, %v163_v12  ;;  %v271_v19 = vmax.f32 %v267_v11, 0.0 }
  0xde   :  { %v276_v18 = vrot.slane %v275_v13, 4 }
  0xdf   :  { %v268_v20 = vadd.f32 %v264_v16, %v262_v17  ;;  %v282_v24 = vsel %vm80_vm0, %v271_v19, 0.0 }
  0xe0   :  { %v277_v21 = vadd.f32 %v276_v18, %v275_v13 }
  0xe1   :  { %v272_v22 = vmax.f32 %v268_v20, 0.0 }
  0xe2   :  { %v278_v23 = vrot.slane %v277_v21, 2 }
  0xe3   :  { %v283_v25 = vsel %vm80_vm0, %v272_v22, 0.0 }
  0xe4   :  { %v279_v26 = vadd.f32 %v278_v23, %v277_v21  ;;  %v284_v27 = vadd.f32 %v283_v25, %v282_v24 }
  0xe6   :  { %v280_v28 = vrot.slane %v279_v26, 1  ;;  %v285_v30 = vrot.slane %v284_v27, 4 }
  0xe8   :  { %v286_v32 = vadd.f32 %v285_v30, %v284_v27  ;;  %v281_v29 = vadd.f32 %v280_v28, %v279_v26 }
  0xea   :  { %v287_v33 = vrot.slane %v286_v32, 2  ;;  %v291_v35 = vmul.f32 0.125, %v281_v29 }
  0xec   :  { %v288_v31 = vadd.f32 %v287_v33, %v286_v32  ;;  %v293_v38 = vpack.c.bf16 %v291_v35, %v291_v35 }
  0xee   :  { %v289_v34 = vrot.slane %v288_v31, 1  ;;  %v308_v40 = vunpack.c.l.b16 %v293_v38 }
  0xf0   :  { %v290_v36 = vadd.f32 %v289_v34, %v288_v31 }
  0xf2   :  { %v292_v37 = vmul.f32 0.125, %v290_v36 }
  0xf4   :  { %v294_v39 = vpack.c.bf16 %v292_v37, %v292_v37 }
  0xf6   :  { %v309_v41 = vunpack.c.l.b16 %v294_v39 }
  0xf8   :  { %v311_v42 = vsel %vm310_vm10, %v309_v41, %v308_v40 }
  0xf9   :  { %v312_v43 = vpack.c.b16 %v311_v42, %v311_v42 }
  0xfb   :  { %428 = vmatmul.mubr.msk.bf16.vlgmr.msra.gmra.mxu1 %vm80_vm0, %v312_v43 }
 0x1bb   :  { %v362_v45 = vpop.f32.mrf.mxu1 }
 0x1bc   :  { %v363_v46 = vadd.f32 %v398_v44, %v362_v45 }
 0x1bd   :  { %v429_v47 = vpop.f32.mrf.mxu1 }
 0x1be   :  { %368 = vst [vmem:[#allocation3] sm:$0x3] %v363_v46 }
 0x1bf   :  { %v365_v48 = vpop.f32.mrf.mxu1 }
 0x1c0   :  { %459 = shalt.err (!%p456_p4)
}
 0x1c1   :  { %378 = dma.vmem_to_hbm [thread:$0]  %s376_s23, 32, %s584_s7, [#allocation4]   ;;  %v430_v49 = vpop.f32.mrf.mxu1 }
 0x1c2   :  { %468 = dma.done.wait [#allocation4], 32  }
 0x1c3   :  { %469 = vsyncadd [#allocation4], 4294967264 }
 0x1c4   :  { %382 = vsyncpa [#allocation4], 1 }

</bundles_post_ra>
